<compile_context>
chip_gen: v7x
topology: tpu7x:2x2x1
jax: 0.10.0
libtpu: 0.0.40
codegen_flags: <defaults>
</compile_context>

<pallas_src>
import math

import jax
import jax.numpy as jnp
from jax.experimental import pallas as pl
from jax.experimental.pallas import tpu as pltpu


# ----------------------------------------------------------------------------
# Pallas kernel: out = tok*w[0] + pap*w[1] + pos*w[2] + w[3]   (elementwise, VPU)
# ----------------------------------------------------------------------------
def _combine_kernel(w_ref, tok_ref, pap_ref, pos_ref, o_ref):
    o_ref[...] = (tok_ref[...] * w_ref[0:1, :]
                  + pap_ref[...] * w_ref[1:2, :]
                  + pos_ref[...] * w_ref[2:3, :]
                  + w_ref[3:4, :]).astype(o_ref.dtype)


def _cdiv(a, b):
    return -(-a // b)


def _round_up(x, m):
    return ((x + m - 1) // m) * m


# ~4 MiB f32 per operand block: 4 pipelined arrays x 2 buffers x 4 MiB = 32 MiB,
# comfortably under the 48 MiB scoped-VMEM limit on every generation
# (v5e/v6e: 128 MiB physical VMEM, v7x: 64 MiB).
_MAX_BLOCK_ELEMS = 1 << 20
_VMEM_LIMIT_BYTES = 48 * 1024 * 1024


def _choose_tile_rows(n_folded, lane_dim):
    max_rows = max(8, (_MAX_BLOCK_ELEMS // lane_dim) // 8 * 8)
    # Keep >= 2 grid steps when there is enough work so the "parallel" axis
    # can shard across v7x's two TensorCores.
    half = max(8, _round_up(_cdiv(n_folded, 2), 8))
    tile = max(8, min(max_rows, half))
    if tile >= n_folded:
        tile = n_folded          # single full-extent block (small inputs)
    return tile


def _weighted_combine(tok_f, pap_f, pos_f, wstack_f):
    """tok/pap/pos: (n_folded, Df) f32; wstack: (4, Df) -> (n_folded, Df) f32."""
    n_folded, Df = tok_f.shape
    tile_rows = _choose_tile_rows(n_folded, Df)
    grid = (pl.cdiv(n_folded, tile_rows),)     # ragged last block is masked

    row_spec = pl.BlockSpec((tile_rows, Df), lambda i: (i, 0))
    w_spec = pl.BlockSpec((4, Df), lambda i: (0, 0))   # VMEM-resident across grid

    return pl.pallas_call(
        _combine_kernel,
        out_shape=jax.ShapeDtypeStruct((n_folded, Df), jnp.float32),
        grid_spec=pltpu.PrefetchScalarGridSpec(
            num_scalar_prefetch=0,
            grid=grid,
            in_specs=[w_spec, row_spec, row_spec, row_spec],
            out_specs=row_spec,
        ),
        compiler_params=pltpu.CompilerParams(
            dimension_semantics=("parallel",),
            vmem_limit_bytes=_VMEM_LIMIT_BYTES,
        ),
    )(wstack_f, tok_f, pap_f, pos_f)


# ----------------------------------------------------------------------------
# Module wrapper (params + forward)
# ----------------------------------------------------------------------------
def init_params(key, vocab_size, n_papers, embed_size, max_len):
    k1, k2, k3, k4 = jax.random.split(key, 4)
    std = 0.02
    token = jax.random.normal(k1, (vocab_size, embed_size), jnp.float32) * std
    position = jax.random.normal(k2, (max_len, embed_size), jnp.float32) * std
    paper = jax.random.normal(k3, (n_papers, embed_size), jnp.float32) * std
    # padding_idx=0 -> row 0 is zeros (torch.nn.Embedding init behaviour)
    token = token.at[0].set(0.0)
    position = position.at[0].set(0.0)
    paper = paper.at[0].set(0.0)
    emb_w = jax.random.normal(k4, (3, embed_size), jnp.float32) * std
    emb_b = jnp.zeros((embed_size,), jnp.float32)
    return dict(token=token, position=position, paper=paper,
                weights=emb_w, bias=emb_b)


def bert_embedding_aepew(params, sequence, position_ids, paper_ids):
    """sequence/position_ids/paper_ids: (B, S) int32 -> (B, S, D) float32."""
    B, S = sequence.shape
    D = params["token"].shape[1]
    N = B * S

    # Lane folding: k consecutive rows fold into the lane axis so the kernel's
    # last dim (Df = k*D) is always a multiple of 128.
    k = 128 // math.gcd(D, 128)
    Df = k * D
    n_folded = _cdiv(N, k)
    n_pad = n_folded * k

    def flat_ids(ids):
        ids = ids.reshape(-1)
        if n_pad != N:
            ids = jnp.pad(ids, (0, n_pad - N))   # tiny int32 pad, not (N, D)
        return ids

    seq_ids = flat_ids(sequence)
    pap_ids = flat_ids(paper_ids)
    pos_ids = flat_ids(position_ids)

    # Embedding gathers (glue, plain JAX / XLA gather).
    # TODO(synk): fuse the gathers into the kernel (scalar-prefetched ids +
    # batched row-DMA gather from HBM tables) once D >= ~512 (row >= 2 KiB).
    tok = jnp.take(params["token"], seq_ids, axis=0).reshape(n_folded, Df)
    pap = jnp.take(params["paper"], pap_ids, axis=0).reshape(n_folded, Df)
    pos = jnp.take(params["position"], pos_ids, axis=0).reshape(n_folded, Df)

    # Weights (3, D) + bias (D,) -> one resident (4, Df) operand, lane-tiled to
    # match the row folding.
    wstack = jnp.concatenate(
        [params["weights"], params["bias"].reshape(1, D)], axis=0)   # (4, D)
    if k > 1:
        wstack = jnp.tile(wstack, (1, k))                            # (4, Df)

    out_f = _weighted_combine(tok, pap, pos, wstack)

    out = out_f.reshape(n_pad, D)
    if n_pad != N:
        out = out[:N]
    # TODO(synk): training-mode dropout (p=0.1) not applied; eval-mode identity.
    return out.reshape(B, S, D)


# ----------------------------------------------------------------------------
# Pure-JAX reference (mirrors the torch einsum exactly)
# ----------------------------------------------------------------------------
def reference(params, sequence, position_ids, paper_ids):
    tok = params["token"][sequence][:, :, None, :]          # (B, S, 1, D)
    pap = params["paper"][paper_ids][:, :, None, :]
    pos = params["position"][position_ids][:, :, None, :]
    cat = jnp.concatenate([tok, pap, pos], axis=2)          # (B, S, 3, D)
    x = jnp.einsum("bsed,ed->bsd", cat, params["weights"])
    return x + params["bias"]


def _run_case(key, vocab_size, n_papers, embed_size, max_len, B, S):
    pkey, k_seq, k_pap = jax.random.split(key, 3)
    params = init_params(pkey, vocab_size, n_papers, embed_size, max_len)
    sequence = jax.random.randint(k_seq, (B, S), 0, vocab_size, jnp.int32)
    paper_ids = jax.random.randint(k_pap, (B, S), 0, n_papers, jnp.int32)
    position_ids = jnp.broadcast_to(jnp.arange(S, dtype=jnp.int32), (B, S))

    out = bert_embedding_aepew(params, sequence, position_ids, paper_ids)
    out = jax.block_until_ready(out)

    ref = reference(params, sequence, position_ids, paper_ids)
    assert out.shape == (B, S, embed_size)
    assert jnp.allclose(out, ref, atol=1e-5, rtol=1e-5), "mismatch vs reference"


if __name__ == "__main__":
    key = jax.random.PRNGKey(0)
    k1, k2 = jax.random.split(key)

    # Small aligned case (single full-extent block).
    _run_case(k1, vocab_size=64, n_papers=16, embed_size=32, max_len=8, B=2, S=8)
    # Unaligned case: exercises id padding + ragged (masked) last grid block.
    _run_case(k2, vocab_size=64, n_papers=16, embed_size=32, max_len=64, B=3, S=37)

    print("KERNEL_OK")
</pallas_src>

<mosaic_0001>
module attributes {stable_mosaic.version = 11 : i64} {
  func.func @_combine_kernel(%arg0: i32, %arg1: memref<4x128xf32, #tpu.memory_space<vmem>>, %arg2: memref<4x128xf32, #tpu.memory_space<vmem>>, %arg3: memref<4x128xf32, #tpu.memory_space<vmem>>, %arg4: memref<4x128xf32, #tpu.memory_space<vmem>>, %arg5: memref<4x128xf32, #tpu.memory_space<vmem>>) attributes {dimension_semantics = [#tpu.dimension_semantics<parallel>], iteration_bounds = array<i64: 1>, scalar_prefetch = 0 : i64, scratch_operands = 0 : i64, tpu.core_type = #tpu.core_type<tc>, window_params = [{pipeline_mode = #tpu.pipeline_mode<synchronous>, transform_indices = @transform_0, window_bounds = array<i64: 4, 128>}, {transform_indices = @transform_1, window_bounds = array<i64: 4, 128>}, {transform_indices = @transform_2, window_bounds = array<i64: 4, 128>}, {transform_indices = @transform_3, window_bounds = array<i64: 4, 128>}, {transform_indices = @transform_4, window_bounds = array<i64: 4, 128>}]} {
    %c0 = arith.constant 0 : index
    %c0_0 = arith.constant 0 : index
    %0 = vector.load %arg2[%c0, %c0_0] : memref<4x128xf32, #tpu.memory_space<vmem>>, vector<4x128xf32>
    %c0_1 = arith.constant 0 : index
    %c0_2 = arith.constant 0 : index
    %1 = vector.load %arg1[%c0_1, %c0_2] : memref<4x128xf32, #tpu.memory_space<vmem>>, vector<1x128xf32>
    %2 = vector.broadcast %1 : vector<1x128xf32> to vector<4x128xf32>
    %3 = arith.mulf %0, %2 : vector<4x128xf32>
    %c0_3 = arith.constant 0 : index
    %c0_4 = arith.constant 0 : index
    %4 = vector.load %arg3[%c0_3, %c0_4] : memref<4x128xf32, #tpu.memory_space<vmem>>, vector<4x128xf32>
    %c1 = arith.constant 1 : index
    %c0_5 = arith.constant 0 : index
    %5 = vector.load %arg1[%c1, %c0_5] : memref<4x128xf32, #tpu.memory_space<vmem>>, vector<1x128xf32>
    %6 = vector.broadcast %5 : vector<1x128xf32> to vector<4x128xf32>
    %7 = arith.mulf %4, %6 : vector<4x128xf32>
    %8 = arith.addf %3, %7 : vector<4x128xf32>
    %c0_6 = arith.constant 0 : index
    %c0_7 = arith.constant 0 : index
    %9 = vector.load %arg4[%c0_6, %c0_7] : memref<4x128xf32, #tpu.memory_space<vmem>>, vector<4x128xf32>
    %c2 = arith.constant 2 : index
    %c0_8 = arith.constant 0 : index
    %10 = vector.load %arg1[%c2, %c0_8] : memref<4x128xf32, #tpu.memory_space<vmem>>, vector<1x128xf32>
    %11 = vector.broadcast %10 : vector<1x128xf32> to vector<4x128xf32>
    %12 = arith.mulf %9, %11 : vector<4x128xf32>
    %13 = arith.addf %8, %12 : vector<4x128xf32>
    %c3 = arith.constant 3 : index
    %c0_9 = arith.constant 0 : index
    %14 = vector.load %arg1[%c3, %c0_9] : memref<4x128xf32, #tpu.memory_space<vmem>>, vector<1x128xf32>
    %15 = vector.broadcast %14 : vector<1x128xf32> to vector<4x128xf32>
    %16 = arith.addf %13, %15 : vector<4x128xf32>
    %c0_10 = arith.constant 0 : index
    %c0_11 = arith.constant 0 : index
    %17 = vector.load %arg5[%c0_10, %c0_11] : memref<4x128xf32, #tpu.memory_space<vmem>>, vector<4x128xf32>
    tpu.vector_store %arg5[%c0_10, %c0_11], %16 {strides = array<i32>} : memref<4x128xf32, #tpu.memory_space<vmem>>, vector<4x128xf32>,
    return
  }
  func.func @transform_0(%arg0: i32) -> (i32, i32) {
    %c0_i32 = arith.constant 0 : i32
    %c0_i32_0 = arith.constant 0 : i32
    %c0_i32_1 = arith.constant 0 : i32
    return %c0_i32, %c0_i32_0 : i32, i32
  }
  func.func @transform_1(%arg0: i32) -> (i32, i32) {
    %c0_i32 = arith.constant 0 : i32
    %c0_i32_0 = arith.constant 0 : i32
    return %arg0, %c0_i32 : i32, i32
  }
  func.func @transform_2(%arg0: i32) -> (i32, i32) {
    %c0_i32 = arith.constant 0 : i32
    %c0_i32_0 = arith.constant 0 : i32
    return %arg0, %c0_i32 : i32, i32
  }
  func.func @transform_3(%arg0: i32) -> (i32, i32) {
    %c0_i32 = arith.constant 0 : i32
    %c0_i32_0 = arith.constant 0 : i32
    return %arg0, %c0_i32 : i32, i32
  }
  func.func @transform_4(%arg0: i32) -> (i32, i32) {
    %c0_i32 = arith.constant 0 : i32
    %c0_i32_0 = arith.constant 0 : i32
    return %arg0, %c0_i32 : i32, i32
  }
}

</mosaic_0001>

<bundles_post_ra>
// kernel: tpu_custom_call.1
= control target key start
LH: loop header
LB: loop body
LE: loop exit
PB: predicated region body
PF: predicated region fallthrough
CT: control target
= control target key end

     0   :  { %9 = vsyncpa [#allocation3], 0  ;;  %s237_s0 = inlined_call_operand.hbm [shape: f32[4,128], index: 0, kind: input, shape index: {}]   ;;  %s238_s1 = inlined_call_operand.hbm [shape: f32[4,128], index: 1, kind: input, shape index: {}]   ;;  %s239_s2 = inlined_call_operand.vmem [shape: f32[4,128], index: 2, kind: input, shape index: {}]   ;;  %s240_s3 = inlined_call_operand.vmem [shape: f32[4,128], index: 3, kind: input, shape index: {}]   ;;  %s241_s4 = inlined_call_operand.hbm [shape: f32[4,128], index: 4, kind: output, shape index: {}]  }
   0x1   :  { %10 = vsyncpa [#allocation6], 0 }
   0x2   :  { %11 = vsyncpa [#allocation4], 0  ;;  %s167_s15 = smov [#allocation2]   ;;  %s168_s17 = smov [#allocation5]  }
   0x3   :  { %s18_s16 = sshll.u32 %s167_s15, 4  ;;  %s28_s18 = sshll.u32 %s168_s17, 4  ;;  %s19_s16 = int_to_ptr.vmem [resolvable:$true] %s18_s16  ;;  %s29_s18 = int_to_ptr.vmem [resolvable:$true] %s28_s18 }
   0x4   :  { %s95_s21 = scalar_lea.hbm %s237_s0, 64 }
   0x5   :  { %p96_p0 = scmp.ne.s32.totalorder %s237_s0, %s95_s21  ;;  %p99_p1 = scmp.lt.u32.totalorder %s95_s21, %s237_s0 }
   0x7   :  { %p101_p2 = pnand %p99_p1, %p96_p0 }
   0x9   :  { %104 = shalt.err (!%p101_p2)
}
   0xa   :  { %s105_s26 = scalar_lea.vmem %s19_s16, 64  ;;  %p110_p4 = scmp.lt.s32.totalorder %s19_s16, %s19_s16 }
   0xb   :  { %p106_p3 = scmp.ne.s32.totalorder %s19_s16, %s105_s26  ;;  %p111_p5 = scmp.lt.s32.totalorder %s105_s26, %s105_s26 }
   0xd   :  { %p112_p6 = por %p111_p5, %p110_p4 }
   0xf   :  { %p113_p7 = pnand %p112_p6, %p106_p3 }
  0x11   :  { %116 = shalt.err (!%p113_p7)
}
  0x12   :  { %21 = dma.hbm_to_vmem [thread:$0]  %s237_s0, 64, %s19_s16, [#allocation3]  }
  0x13   :  { %s117_s5 = scalar_lea.hbm %s238_s1, 64 }
  0x14   :  { %p118_p8 = scmp.ne.s32.totalorder %s238_s1, %s117_s5  ;;  %p121_p9 = scmp.lt.u32.totalorder %s117_s5, %s238_s1 }
  0x16   :  { %p123_p10 = pnand %p121_p9, %p118_p8 }
  0x18   :  { %126 = shalt.err (!%p123_p10)
}
  0x19   :  { %s127_s10 = scalar_lea.vmem %s29_s18, 64  ;;  %p132_p12 = scmp.lt.s32.totalorder %s29_s18, %s29_s18 }
  0x1a   :  { %p128_p11 = scmp.ne.s32.totalorder %s29_s18, %s127_s10  ;;  %p133_p13 = scmp.lt.s32.totalorder %s127_s10, %s127_s10 }
  0x1c   :  { %p134_p0 = por %p133_p13, %p132_p12 }
  0x1e   :  { %p135_p1 = pnand %p134_p0, %p128_p11 }
  0x20   :  { %138 = shalt.err (!%p135_p1)
}
  0x21   :  { %31 = dma.hbm_to_vmem [thread:$0]  %s238_s1, 64, %s29_s18, [#allocation6]  }
  0x22   :  { %161 = dma.done.wait [#allocation3], 64  }
  0x23   :  { %162 = vsyncadd [#allocation3], 4294967232 }
  0x24   :  { %163 = dma.done.wait [#allocation6], 64  }
  0x25   :  { %164 = vsyncadd [#allocation6], 4294967232  ;;  %v42_v0 = vld [vmem:[#allocation5] sm:$0xf]  ;;  %v88_v1 = vld [vmem:[#allocation2] ss:$0 sm:$0xff] }
  0x26   :  { %v49_v2 = vld [vmem:[%s239_s2] sm:$0xf]  ;;  %v48_v3 = vmul.f32 %v88_v1, %v42_v0  ;;  %s169_s1 = smov [#allocation7]  }
  0x27   :  { %v89_v4 = vld [vmem:[#allocation2 + $0x1] ss:$0 sm:$0xff]  ;;  %v90_v6 = vld [vmem:[#allocation2 + $0x2] ss:$0 sm:$0xff]  ;;  %v91_v10 = vld [vmem:[#allocation2 + $0x3] ss:$0 sm:$0xff] }
  0x28   :  { %v57_v5 = vld [vmem:[%s240_s3] sm:$0xf]  ;;  %v55_v7 = vmul.f32 %v89_v4, %v49_v2  ;;  %s78_s16 = sshll.u32 %s169_s1, 4  ;;  %s79_s16 = int_to_ptr.vmem [resolvable:$true] %s78_s16 }
  0x29   :  { %v63_v8 = vmul.f32 %v90_v6, %v57_v5  ;;  %s139_s17 = scalar_lea.vmem %s79_s16, 64  ;;  %p144_p3 = scmp.lt.s32.totalorder %s79_s16, %s79_s16 }
  0x2a   :  { %v56_v9 = vadd.f32 %v55_v7, %v48_v3  ;;  %p140_p2 = scmp.ne.s32.totalorder %s79_s16, %s139_s17  ;;  %p145_p4 = scmp.lt.s32.totalorder %s139_s17, %s139_s17 }
  0x2c   :  { %v64_v11 = vadd.f32 %v63_v8, %v56_v9  ;;  %p146_p5 = por %p145_p4, %p144_p3 }
  0x2e   :  { %v70_v12 = vadd.f32 %v91_v10, %v64_v11  ;;  %p147_p6 = pnand %p146_p5, %p140_p2 }
  0x30   :  { %71 = vst [vmem:[#allocation7] sm:$0xf] %v70_v12 }
  0x31   :  { %150 = shalt.err (!%p147_p6)
}
  0x32   :  { %s151_s18 = scalar_lea.hbm %s241_s4, 64 }
  0x33   :  { %p152_p7 = scmp.ne.s32.totalorder %s241_s4, %s151_s18  ;;  %p155_p8 = scmp.lt.u32.totalorder %s151_s18, %s241_s4 }
  0x35   :  { %p157_p9 = pnand %p155_p8, %p152_p7 }
  0x37   :  { %160 = shalt.err (!%p157_p9)
}
  0x38   :  { %81 = dma.vmem_to_hbm [thread:$0]  %s79_s16, 64, %s241_s4, [#allocation4]  }
  0x39   :  { %165 = dma.done.wait [#allocation4], 64  }
  0x3a   :  { %166 = vsyncadd [#allocation4], 4294967232 }
  0x3b   :  { %85 = vsyncpa [#allocation3], 1 }
  0x3c   :  { %86 = vsyncpa [#allocation6], 1 }
  0x3d   :  { %87 = vsyncpa [#allocation4], 1 }

</bundles_post_ra>
